<compile_context>
chip_gen: v7x
topology: tpu7x:2x2x1
jax: 0.10.0
libtpu: 0.0.40
codegen_flags: <defaults>
</compile_context>

<pallas_src>
import functools

import jax
import jax.numpy as jnp
from jax.experimental import pallas as pl
from jax.experimental.pallas import tpu as pltpu


def _round_up(x, m):
    return ((x + m - 1) // m) * m


def _mlp_kernel(x_ref, w1_ref, b1_ref, w2_ref, b2_ref, w3_ref, b3_ref, o_ref):
    """Fused 3-layer MLP on one batch tile.

    x_ref : (tb, n_input)          VMEM, compute dtype (bf16)
    w1_ref: (n_input, n_hidden)    compute dtype
    b1_ref: (1, n_hidden)          f32
    w2_ref: (n_hidden, n_hidden)   compute dtype
    b2_ref: (1, n_hidden)          f32
    w3_ref: (n_hidden, n_out_pad)  compute dtype (columns zero-padded to 128-lane multiple)
    b3_ref: (1, n_out_pad)         f32
    o_ref : (tb, n_out_pad)
    """
    compute_dtype = w1_ref.dtype

    # Layer 1: bf16 operands into the MXU, f32 accumulate, f32 bias/tanh (VPU/EUP).
    h1 = jnp.tanh(
        jnp.dot(x_ref[...], w1_ref[...], preferred_element_type=jnp.float32)
        + b1_ref[...]
    )
    # Layer 2.
    h2 = jnp.tanh(
        jnp.dot(h1.astype(compute_dtype), w2_ref[...],
                preferred_element_type=jnp.float32)
        + b2_ref[...]
    )
    # Output layer (no activation), lane-dense store.
    out = (
        jnp.dot(h2.astype(compute_dtype), w3_ref[...],
                preferred_element_type=jnp.float32)
        + b3_ref[...]
    )
    o_ref[...] = out.astype(o_ref.dtype)


@functools.partial(jax.jit, static_argnames=("batch_tile", "compute_dtype"))
def mlp_forward(x, w1, b1, w2, b2, w3, b3, *, batch_tile=512,
                compute_dtype=jnp.bfloat16):
    out_dtype = x.dtype
    B, n_input = x.shape
    n_hidden = w1.shape[1]
    n_output = w3.shape[1]

    # --- Lane-densify the output: pad n_output (and w3/b3) to a 128 multiple so
    #     stores are unmasked vst and the output DMA is contiguous.
    n_out_pad = _round_up(max(n_output, 128), 128)
    if n_out_pad != n_output:
        w3 = jnp.pad(w3, ((0, 0), (0, n_out_pad - n_output)))
        b3 = jnp.pad(b3, ((0, 0), (0, n_out_pad - n_output)))

    # --- Batch tile: large (default 512) for MXU utilization, clamped to the
    #     actual batch, kept a multiple of 8 sublanes.  Pad batch to a tile
    #     multiple with zero rows (sliced off at the end).
    tb = min(batch_tile, _round_up(B, 8))
    tb = max(8, (tb // 8) * 8)
    B_pad = _round_up(B, tb)
    if B_pad != B:
        x = jnp.pad(x, ((0, B_pad - B), (0, 0)))

    # --- bf16 matmul operands (f32 accumulation inside the kernel); biases f32.
    x_c = x.astype(compute_dtype)
    w1_c = w1.astype(compute_dtype)
    w2_c = w2.astype(compute_dtype)
    w3_c = w3.astype(compute_dtype)
    b1_f = b1.astype(jnp.float32)
    b2_f = b2.astype(jnp.float32)
    b3_f = b3.astype(jnp.float32)

    grid = (B_pad // tb,)

    # Weights/biases stay fully resident in VMEM each grid step (constant
    # index_map); only x / out are tiled along the batch axis.
    # NOTE: the pipeline double-buffers these resident weights; at n_hidden=500
    # (the PyTorch default) that is ~2 x ~1.3 MiB in bf16 — trivially within the
    # 32 MiB scoped VMEM budget on all generations (incl. v7x's 64 MiB physical).
    in_specs = [
        pl.BlockSpec((tb, n_input), lambda i: (i, 0)),          # x tile
        pl.BlockSpec((n_input, n_hidden), lambda i: (0, 0)),    # w1
        pl.BlockSpec((1, n_hidden), lambda i: (0, 0)),          # b1
        pl.BlockSpec((n_hidden, n_hidden), lambda i: (0, 0)),   # w2
        pl.BlockSpec((1, n_hidden), lambda i: (0, 0)),          # b2
        pl.BlockSpec((n_hidden, n_out_pad), lambda i: (0, 0)),  # w3 (lane-padded)
        pl.BlockSpec((1, n_out_pad), lambda i: (0, 0)),         # b3 (lane-padded)
    ]
    out_specs = pl.BlockSpec((tb, n_out_pad), lambda i: (i, 0))

    # Advisory cost estimate so XLA schedules the custom call sensibly.
    c_bytes = jnp.dtype(compute_dtype).itemsize
    flops = 2 * B_pad * (n_input * n_hidden + n_hidden * n_hidden
                         + n_hidden * n_out_pad)
    transcendentals = 2 * B_pad * n_hidden
    bytes_accessed = (
        B_pad * n_input * c_bytes
        + (n_input * n_hidden + n_hidden * n_hidden + n_hidden * n_out_pad) * c_bytes
        + (2 * n_hidden + n_out_pad) * 4
        + B_pad * n_out_pad * jnp.dtype(out_dtype).itemsize
    )

    out = pl.pallas_call(
        _mlp_kernel,
        out_shape=jax.ShapeDtypeStruct((B_pad, n_out_pad), out_dtype),
        grid_spec=pl.GridSpec(grid=grid, in_specs=in_specs, out_specs=out_specs),
        compiler_params=pltpu.CompilerParams(
            # "parallel" lets Mosaic shard batch-grid steps across both
            # TensorCores on v7x; it is a no-op (harmless) on v5e/v6e.
            dimension_semantics=("parallel",),
            vmem_limit_bytes=32 * 1024 * 1024,
        ),
        cost_estimate=pl.CostEstimate(
            flops=flops,
            transcendentals=transcendentals,
            bytes_accessed=bytes_accessed,
        ),
    )(x_c, w1_c, b1_f, w2_c, b2_f, w3_c, b3_f)

    # Slice off batch padding and output-lane padding.
    return out[:B, :n_output]


def init_mlp_params(key, n_input, n_output, n_hidden):
    """Deterministic synthetic params. Shapes mirror torch.nn.Linear
    (but stored transposed: (fan_in, fan_out))."""
    k1, k2, k3, k4, k5, k6 = jax.random.split(key, 6)

    def uniform(k, shape, fan_in):
        bound = 1.0 / jnp.sqrt(fan_in)
        return jax.random.uniform(k, shape, jnp.float32, -bound, bound)

    w1 = uniform(k1, (n_input, n_hidden), n_input)
    b1 = uniform(k2, (1, n_hidden), n_input)
    w2 = uniform(k3, (n_hidden, n_hidden), n_hidden)
    b2 = uniform(k4, (1, n_hidden), n_hidden)
    w3 = uniform(k5, (n_hidden, n_output), n_hidden)
    b3 = uniform(k6, (1, n_output), n_hidden)
    return w1, b1, w2, b2, w3, b3


def mlp_reference(x, w1, b1, w2, b2, w3, b3, compute_dtype=jnp.bfloat16):
    """Pure-JAX reference applying the same bf16-operand / f32-accumulate math."""
    c = compute_dtype
    h1 = jnp.tanh(
        jnp.dot(x.astype(c), w1.astype(c), preferred_element_type=jnp.float32) + b1
    )
    h2 = jnp.tanh(
        jnp.dot(h1.astype(c), w2.astype(c), preferred_element_type=jnp.float32) + b2
    )
    return jnp.dot(h2.astype(c), w3.astype(c),
                   preferred_element_type=jnp.float32) + b3


if __name__ == "__main__":
    # Small shapes consistent with MLP(n_input, n_output, n_hidden).
    batch, n_input, n_hidden, n_output = 8, 32, 128, 8

    key = jax.random.PRNGKey(0)
    kx, kp = jax.random.split(key)
    x = jax.random.normal(kx, (batch, n_input), jnp.float32)
    params = init_mlp_params(kp, n_input, n_output, n_hidden)

    out = jax.block_until_ready(mlp_forward(x, *params))
    ref = mlp_reference(x, *params)
    assert out.shape == (batch, n_output)
    assert jnp.allclose(out, ref, atol=1e-2, rtol=1e-2), "mismatch vs reference"

    # Non-multiple-of-tile batch: exercises batch padding + a multi-step grid.
    x2 = jax.random.normal(jax.random.PRNGKey(1), (300, n_input), jnp.float32)
    out2 = jax.block_until_ready(mlp_forward(x2, *params, batch_tile=128))
    ref2 = mlp_reference(x2, *params)
    assert out2.shape == (300, n_output)
    assert jnp.allclose(out2, ref2, atol=1e-2, rtol=1e-2), "mismatch vs reference (tiled)"

    print("KERNEL_OK")
</pallas_src>

<mosaic_0001>
module attributes {stable_mosaic.version = 11 : i64} {
  func.func @_mlp_kernel(%arg0: i32, %arg1: memref<8x32xbf16, #tpu.memory_space<vmem>>, %arg2: memref<32x128xbf16, #tpu.memory_space<vmem>>, %arg3: memref<1x128xf32, #tpu.memory_space<vmem>>, %arg4: memref<128x128xbf16, #tpu.memory_space<vmem>>, %arg5: memref<1x128xf32, #tpu.memory_space<vmem>>, %arg6: memref<128x128xbf16, #tpu.memory_space<vmem>>, %arg7: memref<1x128xf32, #tpu.memory_space<vmem>>, %arg8: memref<8x128xf32, #tpu.memory_space<vmem>>) attributes {dimension_semantics = [#tpu.dimension_semantics<parallel>], iteration_bounds = array<i64: 1>, scalar_prefetch = 0 : i64, scratch_operands = 0 : i64, tpu.core_type = #tpu.core_type<tc>, window_params = [{transform_indices = @transform_0, window_bounds = array<i64: 8, 32>}, {pipeline_mode = #tpu.pipeline_mode<synchronous>, transform_indices = @transform_1, window_bounds = array<i64: 32, 128>}, {pipeline_mode = #tpu.pipeline_mode<synchronous>, transform_indices = @transform_2, window_bounds = array<i64: 1, 128>}, {pipeline_mode = #tpu.pipeline_mode<synchronous>, transform_indices = @transform_3, window_bounds = array<i64: 128, 128>}, {pipeline_mode = #tpu.pipeline_mode<synchronous>, transform_indices = @transform_4, window_bounds = array<i64: 1, 128>}, {pipeline_mode = #tpu.pipeline_mode<synchronous>, transform_indices = @transform_5, window_bounds = array<i64: 128, 128>}, {pipeline_mode = #tpu.pipeline_mode<synchronous>, transform_indices = @transform_6, window_bounds = array<i64: 1, 128>}, {transform_indices = @transform_7, window_bounds = array<i64: 8, 128>}]} {
    %c0 = arith.constant 0 : index
    %c0_0 = arith.constant 0 : index
    %0 = vector.load %arg1[%c0, %c0_0] : memref<8x32xbf16, #tpu.memory_space<vmem>>, vector<8x32xbf16>
    %c0_1 = arith.constant 0 : index
    %c0_2 = arith.constant 0 : index
    %1 = vector.load %arg2[%c0_1, %c0_2] : memref<32x128xbf16, #tpu.memory_space<vmem>>, vector<32x128xbf16>
    %cst = arith.constant dense<0.000000e+00> : vector<8x128xf32>
    %2 = tpu.matmul %0, %1, %cst {dimension_numbers = #tpu.dot_dimension_numbers<[1], [0], [0], [1], [0, 0, 1, 1], [], []>} : vector<8x32xbf16>, vector<32x128xbf16>, vector<8x128xf32> -> vector<8x128xf32>
    %c0_3 = arith.constant 0 : index
    %c0_4 = arith.constant 0 : index
    %3 = vector.load %arg3[%c0_3, %c0_4] : memref<1x128xf32, #tpu.memory_space<vmem>>, vector<1x128xf32>
    %4 = vector.broadcast %3 : vector<1x128xf32> to vector<8x128xf32>
    %5 = arith.addf %2, %4 : vector<8x128xf32>
    %6 = math.tanh %5 : vector<8x128xf32>
    %7 = arith.truncf %6 : vector<8x128xf32> to vector<8x128xbf16>
    %c0_5 = arith.constant 0 : index
    %c0_6 = arith.constant 0 : index
    %8 = vector.load %arg4[%c0_5, %c0_6] : memref<128x128xbf16, #tpu.memory_space<vmem>>, vector<128x128xbf16>
    %cst_7 = arith.constant dense<0.000000e+00> : vector<8x128xf32>
    %9 = tpu.matmul %7, %8, %cst_7 {dimension_numbers = #tpu.dot_dimension_numbers<[1], [0], [0], [1], [0, 0, 1, 1], [], []>} : vector<8x128xbf16>, vector<128x128xbf16>, vector<8x128xf32> -> vector<8x128xf32>
    %c0_8 = arith.constant 0 : index
    %c0_9 = arith.constant 0 : index
    %10 = vector.load %arg5[%c0_8, %c0_9] : memref<1x128xf32, #tpu.memory_space<vmem>>, vector<1x128xf32>
    %11 = vector.broadcast %10 : vector<1x128xf32> to vector<8x128xf32>
    %12 = arith.addf %9, %11 : vector<8x128xf32>
    %13 = math.tanh %12 : vector<8x128xf32>
    %14 = arith.truncf %13 : vector<8x128xf32> to vector<8x128xbf16>
    %c0_10 = arith.constant 0 : index
    %c0_11 = arith.constant 0 : index
    %15 = vector.load %arg6[%c0_10, %c0_11] : memref<128x128xbf16, #tpu.memory_space<vmem>>, vector<128x128xbf16>
    %cst_12 = arith.constant dense<0.000000e+00> : vector<8x128xf32>
    %16 = tpu.matmul %14, %15, %cst_12 {dimension_numbers = #tpu.dot_dimension_numbers<[1], [0], [0], [1], [0, 0, 1, 1], [], []>} : vector<8x128xbf16>, vector<128x128xbf16>, vector<8x128xf32> -> vector<8x128xf32>
    %c0_13 = arith.constant 0 : index
    %c0_14 = arith.constant 0 : index
    %17 = vector.load %arg7[%c0_13, %c0_14] : memref<1x128xf32, #tpu.memory_space<vmem>>, vector<1x128xf32>
    %18 = vector.broadcast %17 : vector<1x128xf32> to vector<8x128xf32>
    %19 = arith.addf %16, %18 : vector<8x128xf32>
    %c0_15 = arith.constant 0 : index
    %c0_16 = arith.constant 0 : index
    %20 = vector.load %arg8[%c0_15, %c0_16] : memref<8x128xf32, #tpu.memory_space<vmem>>, vector<8x128xf32>
    tpu.vector_store %arg8[%c0_15, %c0_16], %19 {strides = array<i32>} : memref<8x128xf32, #tpu.memory_space<vmem>>, vector<8x128xf32>,
    return
  }
  func.func @transform_0(%arg0: i32) -> (i32, i32) {
    %c0_i32 = arith.constant 0 : i32
    %c0_i32_0 = arith.constant 0 : i32
    return %arg0, %c0_i32 : i32, i32
  }
  func.func @transform_1(%arg0: i32) -> (i32, i32) {
    %c0_i32 = arith.constant 0 : i32
    %c0_i32_0 = arith.constant 0 : i32
    %c0_i32_1 = arith.constant 0 : i32
    return %c0_i32, %c0_i32_0 : i32, i32
  }
  func.func @transform_2(%arg0: i32) -> (i32, i32) {
    %c0_i32 = arith.constant 0 : i32
    %c0_i32_0 = arith.constant 0 : i32
    %c0_i32_1 = arith.constant 0 : i32
    return %c0_i32, %c0_i32_0 : i32, i32
  }
  func.func @transform_3(%arg0: i32) -> (i32, i32) {
    %c0_i32 = arith.constant 0 : i32
    %c0_i32_0 = arith.constant 0 : i32
    %c0_i32_1 = arith.constant 0 : i32
    return %c0_i32, %c0_i32_0 : i32, i32
  }
  func.func @transform_4(%arg0: i32) -> (i32, i32) {
    %c0_i32 = arith.constant 0 : i32
    %c0_i32_0 = arith.constant 0 : i32
    %c0_i32_1 = arith.constant 0 : i32
    return %c0_i32, %c0_i32_0 : i32, i32
  }
  func.func @transform_5(%arg0: i32) -> (i32, i32) {
    %c0_i32 = arith.constant 0 : i32
    %c0_i32_0 = arith.constant 0 : i32
    %c0_i32_1 = arith.constant 0 : i32
    return %c0_i32, %c0_i32_0 : i32, i32
  }
  func.func @transform_6(%arg0: i32) -> (i32, i32) {
    %c0_i32 = arith.constant 0 : i32
    %c0_i32_0 = arith.constant 0 : i32
    %c0_i32_1 = arith.constant 0 : i32
    return %c0_i32, %c0_i32_0 : i32, i32
  }
  func.func @transform_7(%arg0: i32) -> (i32, i32) {
    %c0_i32 = arith.constant 0 : i32
    %c0_i32_0 = arith.constant 0 : i32
    return %arg0, %c0_i32 : i32, i32
  }
}

</mosaic_0001>

<bundles_post_ra>
// kernel: mlp_forward.1
= control target key start
LH: loop header
LB: loop body
LE: loop exit
PB: predicated region body
PF: predicated region fallthrough
CT: control target
= control target key end

     0   :  { %v477_v1 = vmov 0.0   ;;  %vm478_vm0 = vmmov 0   ;;  %vm52_vm1 = vcmask 261120   ;;  %s622_s0 = inlined_call_operand.vmem [shape: bf16[8,32], index: 0, kind: input, shape index: {}]   ;;  %s623_s1 = inlined_call_operand.vmem [shape: bf16[32,128], index: 1, kind: input, shape index: {}]   ;;  %s624_s2 = inlined_call_operand.vmem [shape: f32[1,128], index: 2, kind: input, shape index: {}]   ;;  %s625_s3 = inlined_call_operand.vmem [shape: bf16[128,128], index: 3, kind: input, shape index: {}]   ;;  %s626_s4 = inlined_call_operand.vmem [shape: f32[1,128], index: 4, kind: input, shape index: {}]   ;;  %s627_s5 = inlined_call_operand.vmem [shape: bf16[128,128], index: 5, kind: input, shape index: {}]   ;;  %s628_s6 = inlined_call_operand.vmem [shape: f32[1,128], index: 6, kind: input, shape index: {}]   ;;  %s629_s7 = inlined_call_operand.hbm [shape: f32[8,128], index: 7, kind: output, shape index: {}]  }
   0x1   :  { %v431_v0 = vld [vmem:[%s623_s1] sm:$0xff]   ;;  %380 = vmatprep.subr.bf16.mxu0 %v477_v1  ;;  %388 = vmatprep.subr.bf16.mxu1 %v477_v1  ;;  %v432_v2 = vld [vmem:[%s623_s1 + $0x8] sm:$0xff]   ;;  %v435_v6 = vld [vmem:[%s625_s3 + $0x10] sm:$0xff]  }
   0x2   :  { %381 = vmatpush3.bf16.msra.mxu0 %v431_v0  ;;  %384 = vmatprep.mubr.msk.bf16.mxu0 %vm478_vm0, %v477_v1  ;;  %v433_v3 = vld [vmem:[%s625_s3] sm:$0xff]   ;;  %v434_v4 = vld [vmem:[%s625_s3 + $0x8] sm:$0xff]   ;;  %v436_v7 = vld [vmem:[%s625_s3 + $0x18] sm:$0xff]  }
   0x3   :  { %382 = vmatprep.subr.bf16.mxu0 %v477_v1  ;;  %404 = vmatprep.mubr.msk.bf16.mxu1 %vm478_vm0, %v477_v1  ;;  %v28_v5 = vld [vmem:[%s622_s0] sm:$0xf] }
   0x4   :  { %389 = vmatpush3.bf16.msra.mxu1 %v433_v3 }
   0x5   :  { %390 = vmatprep.subr.bf16.mxu1 %v477_v1 }
   0x6   :  { %383 = vmatpush3.bf16.msra.mxu0 %v432_v2 }
   0x7   :  { %408 = vmatprep.subr.bf16.mxu0 %v477_v1 }
   0x8   :  { %391 = vmatpush3.bf16.msra.mxu1 %v434_v4 }
   0x9   :  { %385 = vmatmul.mubr.msk.bf16.vlgmr.msra.gmra.mrb[0].mxu0 %vm52_vm1, %v28_v5  ;;  %392 = vmatprep.subr.bf16.mxu1 %v477_v1 }
   0xa   :  { %424 = vmatprep.mubr.msk.bf16.mxu0 %vm478_vm0, %v477_v1 }
   0xc   :  { %393 = vmatpush3.bf16.msra.mxu1 %v435_v6 }
   0xd   :  { %394 = vmatprep.subr.bf16.mxu1 %v477_v1 }
   0xe   :  { %12 = vsyncpa [#allocation3], 0  ;;  %v437_v8 = vld [vmem:[%s625_s3 + $0x20] sm:$0xff]   ;;  %v438_v9 = vld [vmem:[%s625_s3 + $0x28] sm:$0xff]   ;;  %s479_s16 = smov [#allocation2]  }
   0xf   :  { %v439_v10 = vld [vmem:[%s625_s3 + $0x30] sm:$0xff]   ;;  %v440_v11 = vld [vmem:[%s625_s3 + $0x38] sm:$0xff]   ;;  %v441_v12 = vld [vmem:[%s627_s5] sm:$0xff]  }
  0x10   :  { %395 = vmatpush3.bf16.msra.mxu1 %v436_v7  ;;  %409 = vmatpush3.bf16.msra.mxu0 %v441_v12  ;;  %v442_v13 = vld [vmem:[%s627_s5 + $0x8] sm:$0xff]   ;;  %v443_v14 = vld [vmem:[%s627_s5 + $0x10] sm:$0xff]   ;;  %v444_v15 = vld [vmem:[%s627_s5 + $0x18] sm:$0xff]  }
  0x11   :  { %396 = vmatprep.subr.bf16.mxu1 %v477_v1  ;;  %410 = vmatprep.subr.bf16.mxu0 %v477_v1  ;;  %v337_v16 = vld [vmem:[%s624_s2] ss:$0 sm:$0xff]  ;;  %v446_v25 = vld [vmem:[%s627_s5 + $0x28] sm:$0xff]   ;;  %v447_v26 = vld [vmem:[%s627_s5 + $0x30] sm:$0xff]  }
  0x12   :  { %v445_v24 = vld [vmem:[%s627_s5 + $0x20] sm:$0xff]   ;;  %v448_v27 = vld [vmem:[%s627_s5 + $0x38] sm:$0xff]   ;;  %s329_s5 = sshll.u32 %s479_s16, 4  ;;  %s330_s5 = int_to_ptr.vmem [resolvable:$true] %s329_s5 }
  0x13   :  { %v341_v28 = vld [vmem:[%s626_s4] ss:$0 sm:$0xff]  ;;  %s453_s4 = scalar_lea.vmem %s330_s5, 128  ;;  %p458_p1 = scmp.lt.s32.totalorder %s330_s5, %s330_s5 }
  0x14   :  { %397 = vmatpush3.bf16.msra.mxu1 %v437_v8  ;;  %411 = vmatpush3.bf16.msra.mxu0 %v442_v13  ;;  %v350_v36 = vld [vmem:[%s628_s6] ss:$0 sm:$0xff]  ;;  %p454_p0 = scmp.ne.s32.totalorder %s330_s5, %s453_s4  ;;  %p459_p2 = scmp.lt.s32.totalorder %s453_s4, %s453_s4 }
  0x15   :  { %398 = vmatprep.subr.bf16.mxu1 %v477_v1  ;;  %412 = vmatprep.subr.bf16.mxu0 %v477_v1 }
  0x16   :  { %p460_p3 = por %p459_p2, %p458_p1 }
  0x18   :  { %399 = vmatpush3.bf16.msra.mxu1 %v438_v9  ;;  %413 = vmatpush3.bf16.msra.mxu0 %v443_v14  ;;  %p461_p4 = pnand %p460_p3, %p454_p0 }
  0x19   :  { %400 = vmatprep.subr.bf16.mxu1 %v477_v1  ;;  %414 = vmatprep.subr.bf16.mxu0 %v477_v1 }
  0x1c   :  { %401 = vmatpush3.bf16.msra.mxu1 %v439_v10  ;;  %415 = vmatpush3.bf16.msra.mxu0 %v444_v15 }
  0x1d   :  { %402 = vmatprep.subr.bf16.mxu1 %v477_v1  ;;  %416 = vmatprep.subr.bf16.mxu0 %v477_v1 }
  0x20   :  { %403 = vmatpush3.bf16.msra.mxu1 %v440_v11  ;;  %417 = vmatpush3.bf16.msra.mxu0 %v445_v24 }
  0x21   :  { %418 = vmatprep.subr.bf16.mxu0 %v477_v1 }
  0x24   :  { %419 = vmatpush3.bf16.msra.mxu0 %v446_v25 }
  0x25   :  { %420 = vmatprep.subr.bf16.mxu0 %v477_v1 }
  0x28   :  { %421 = vmatpush3.bf16.msra.mxu0 %v447_v26 }
  0x29   :  { %422 = vmatprep.subr.bf16.mxu0 %v477_v1 }
  0x2c   :  { %423 = vmatpush3.bf16.msra.mxu0 %v448_v27 }
  0xdc   :  { %v90_v17 = vpop.f32.mrb[0].mxu0 }
  0xdd   :  { %v91_v18 = vadd.f32 %v337_v16, %v90_v17  ;;  %v386_v19 = vpop.f32.mrb[1].mxu0 }
  0xde   :  { %v93_v20 = vpop.f32.mrb[2].mxu0 }
  0xdf   :  { %449 = vtanh.f32 %v91_v18  ;;  %v387_v21 = vpop.f32.mrb[3].mxu0 }
  0xe9   :  { %v450_v22 = vpop.eup %449 }
  0xea   :  { %v97_v23 = vpack.c.bf16 %v450_v22, %v450_v22 }
  0xec   :  { %405 = vmatmul.mubr.bf16.vlgmr.msra.gmra.mrb[0].mxu1 %v97_v23 }
 0x1bf   :  { %v203_v29 = vpop.f32.mrb[0].mxu1 }
 0x1c0   :  { %v204_v30 = vadd.f32 %v341_v28, %v203_v29  ;;  %v406_v31 = vpop.f32.mrb[1].mxu1 }
 0x1c1   :  { %v206_v32 = vpop.f32.mrb[2].mxu1 }
 0x1c2   :  { %451 = vtanh.f32 %v204_v30  ;;  %v407_v33 = vpop.f32.mrb[3].mxu1 }
 0x1cc   :  { %v452_v34 = vpop.eup %451 }
 0x1cd   :  { %v210_v35 = vpack.c.bf16 %v452_v34, %v452_v34 }
 0x1cf   :  { %425 = vmatmul.mubr.bf16.vlgmr.msra.gmra.mrb[4].mxu0 %v210_v35 }
 0x2a2   :  { %v316_v37 = vpop.f32.mrb[4].mxu0 }
 0x2a3   :  { %v317_v38 = vadd.f32 %v350_v36, %v316_v37  ;;  %v426_v39 = vpop.f32.mrb[5].mxu0 }
 0x2a4   :  { %v319_v40 = vpop.f32.mrb[6].mxu0 }
 0x2a5   :  { %322 = vst [vmem:[#allocation2] sm:$0xff] %v317_v38  ;;  %v427_v41 = vpop.f32.mrb[7].mxu0 }
 0x2a6   :  { %464 = shalt.err (!%p461_p4)
}
 0x2a7   :  { %s465_s6 = scalar_lea.hbm %s629_s7, 128 }
 0x2a8   :  { %p466_p5 = scmp.ne.s32.totalorder %s629_s7, %s465_s6  ;;  %p469_p6 = scmp.lt.u32.totalorder %s465_s6, %s629_s7 }
 0x2aa   :  { %p471_p7 = pnand %p469_p6, %p466_p5 }
 0x2ac   :  { %474 = shalt.err (!%p471_p7)
}
 0x2ad   :  { %332 = dma.vmem_to_hbm [thread:$0]  %s330_s5, 128, %s629_s7, [#allocation3]  }
 0x2ae   :  { %475 = dma.done.wait [#allocation3], 128  }
 0x2af   :  { %476 = vsyncadd [#allocation3], 4294967168 }
 0x2b0   :  { %336 = vsyncpa [#allocation3], 1 }

</bundles_post_ra>
